<compile_context>
chip_gen: v7x
topology: tpu7x:2x2x1
jax: 0.10.0
libtpu: 0.0.40
codegen_flags: <defaults>
</compile_context>

<pallas_src>
import functools

import numpy as np

import jax
import jax.numpy as jnp
from jax.experimental import pallas as pl
from jax.experimental.pallas import tpu as pltpu


# --------------------------------------------------------------------------
# helpers
# --------------------------------------------------------------------------
def _round_up(x, m):
    return (x + m - 1) // m * m


def _cut_out(v, nbits=8):
    # cut_out(x, 8): x = (x * 2^(n-1)).round().char().float() / 2^(n-1)
    # TODO(synk): torch's .char() wraps (mod 256) on overflow; emulated with a
    # clip to [-128, 127] — values in this block stay well inside int8 range.
    t = float(2 ** (nbits - 1))
    return jnp.clip(jnp.round(v * t), -t, t - 1.0) * (1.0 / t)


def _fold_bn(gamma, beta, mean, var, eps=1e-5):
    scale = gamma / jnp.sqrt(var + eps)
    shift = beta - mean * scale
    return scale, shift


def _edge_masks(H, W, NB):
    """(4, NB*H*W) {0,1} masks: [h-1 valid, h+1 valid, w-1 valid, w+1 valid].

    Built with numpy so they are baked constants under jit; tiled over the NB
    images that share one grid step's lane axis.
    """
    hh, ww = np.meshgrid(np.arange(H), np.arange(W), indexing="ij")
    m = np.stack([hh - 1 >= 0, hh + 1 < H, ww - 1 >= 0, ww + 1 < W])
    m = m.reshape(4, H * W).astype(np.float32)
    return jnp.asarray(np.tile(m, (1, NB)))


def _pick_batch_chunk(N, L, lane_budget=4096):
    """Largest divisor NB of N with NB*L lanes under a per-step lane budget."""
    nb = 1
    for cand in range(1, N + 1):
        if N % cand == 0 and cand * L <= lane_budget:
            nb = cand
    return nb


# --------------------------------------------------------------------------
# fused kernel
# --------------------------------------------------------------------------
def _residual_block_kernel(x_ref, m_ref, w1_ref, w2_ref, w3_ref, c_ref, o_ref,
                           *, W, NL, use_shortcut):
    x = x_ref[...]                     # (CIN_P, NL) f32, batch*space on lanes
    mh_m = m_ref[0:1, :]               # h-1 valid
    mh_p = m_ref[1:2, :]               # h+1 valid
    mw_m = m_ref[2:3, :]               # w-1 valid
    mw_p = m_ref[3:4, :]               # w+1 valid

    def conv3x3(a, w_ref):
        # o[p] = sum_{dh,dw} w[:, dh, dw, :] @ a[:, p + dh*W + dw]  (masked).
        # Row (dh) taps: two lane rolls of the input + h-edge masks, one
        # K-concat -> (3*C, NL), shared by all three dw matmuls.
        # Column (dw) taps: +-1 roll + w-edge mask applied to the (COUT, NL)
        # partial outputs (3x fewer roll/mask ops than input-side, no 9*C
        # im2col slab).
        # pltpu.roll follows jnp.roll semantics: roll(v, k)[p] == v[(p-k)%NL].
        up = pltpu.roll(a, shift=W, axis=1) * mh_m          # row h-1 at p
        dn = pltpu.roll(a, shift=NL - W, axis=1) * mh_p     # row h+1 at p
        taps = jnp.concatenate([up, a, dn], axis=0).astype(jnp.bfloat16)
        p_m = jnp.dot(w_ref[0], taps, preferred_element_type=jnp.float32)
        p_0 = jnp.dot(w_ref[1], taps, preferred_element_type=jnp.float32)
        p_p = jnp.dot(w_ref[2], taps, preferred_element_type=jnp.float32)
        out = p_0
        out += pltpu.roll(p_m, shift=1, axis=1) * mw_m       # dw = -1
        out += pltpu.roll(p_p, shift=NL - 1, axis=1) * mw_p  # dw = +1
        return out

    # ---- stage 1: conv1 (1/div1 folded into w1) -> cut_out -> bn1 -> relu --
    q = _cut_out(conv3x3(x, w1_ref))
    s1 = c_ref[:, 0:1]
    b1 = c_ref[:, 1:2]
    b23 = c_ref[:, 2:3]
    y1 = jnp.maximum(q * s1 + b1, 0.0)

    # ---- stage 2: conv2 (bn2 scale & 1/div2 folded) (+ shortcut) -----------
    out = conv3x3(y1, w2_ref) + b23
    if use_shortcut:
        # 1x1 conv3 with bn3 scale & 1/div3 folded into w3.  The reference
        # module applies cut_out only inside the `if self.stride:` branch.
        out += jnp.dot(w3_ref[...], x.astype(jnp.bfloat16),
                       preferred_element_type=jnp.float32)
        out = _cut_out(out)
    o_ref[...] = jnp.maximum(out, 0.0)


# --------------------------------------------------------------------------
# wrapper
# --------------------------------------------------------------------------
@functools.partial(jax.jit,
                   static_argnames=("stride", "layer", "cnt", "scale_enable"))
def residual_block_forward(x_nchw, params, *, stride=1, layer=1, cnt=0,
                           scale_enable=True):
    """Forward pass of ResidualBlock. x_nchw: (N, Cin, H, W) float32."""
    if stride != 1:
        # TODO(synk): stride != 1 (spatial downsampling) not implemented.
        raise NotImplementedError("stride != 1 not implemented")

    N, Cin, H, W = x_nchw.shape
    Cout = params["w1"].shape[0]
    L = H * W
    CIN_P, COUT_P = _round_up(Cin, 8), _round_up(Cout, 8)

    special = (layer == 3 or layer == 4) and cnt == 0
    div1 = 2.0 if scale_enable else 1.0
    div2 = 2.0 if (scale_enable and special) else 1.0
    div3 = (4.0 if special else 2.0) if scale_enable else 1.0
    use_shortcut = bool(stride)

    # Batch folded into the lane axis: (N, Cin, H, W) -> (CIN_P, N*L).
    NB = _pick_batch_chunk(N, L)
    NL = NB * L
    x = x_nchw.astype(jnp.float32).reshape(N, Cin, L)
    x = jnp.pad(x, ((0, 0), (0, CIN_P - Cin), (0, 0)))
    x = jnp.transpose(x, (1, 0, 2)).reshape(CIN_P, N * L)

    # Fold BN (eval mode) and the constant /2, /4 scalings into the weights.
    s1, b1 = _fold_bn(*params["bn1"])
    s2, b2 = _fold_bn(*params["bn2"])
    s3, b3 = _fold_bn(*params["bn3"])

    def pad_c(v):  # per-output-channel vector -> (COUT_P,)
        return jnp.pad(v, (0, COUT_P - Cout)).astype(jnp.float32)

    def prep_3x3(w, cin, cin_p, out_scale):
        # (Cout, Cin, 3, 3) -> (3 [dw], COUT_P, 3*CIN_P [dh-major, cin-minor]),
        # per-output-channel scale folded in.  bf16 for 2x MXU throughput and
        # half the weight DMA/VMEM; accumulation stays f32 in the kernel.
        w = jnp.transpose(w, (3, 0, 2, 1)) * out_scale.reshape(1, -1, 1, 1)
        w = jnp.pad(w, ((0, 0), (0, COUT_P - Cout), (0, 0), (0, cin_p - cin)))
        return w.reshape(3, COUT_P, 3 * cin_p).astype(jnp.bfloat16)

    w1d = prep_3x3(params["w1"], Cin, CIN_P, jnp.full((Cout,), 1.0 / div1))
    w2d = prep_3x3(params["w2"], Cout, COUT_P, s2 / div2)
    w3m = params["w3"][:, :, 0, 0] * (s3 / div3)[:, None]
    w3m = jnp.pad(w3m, ((0, COUT_P - Cout), (0, CIN_P - Cin))).astype(
        jnp.bfloat16)

    b23 = pad_c(b2) + (pad_c(b3) if use_shortcut else 0.0)
    cvec = jnp.stack([pad_c(s1), pad_c(b1), b23], axis=1)   # (COUT_P, 3)

    masks = _edge_masks(H, W, NB)

    kernel = functools.partial(_residual_block_kernel, W=W, NL=NL,
                               use_shortcut=use_shortcut)

    # NOTE: at real ResNet shapes, give the constant-index specs (masks,
    # w1d, w2d, w3m, cvec) pipeline_mode=pl.Buffered(1) (no double-buffering)
    # and add an H-tiled second "parallel" grid axis for v7x's two cores;
    # here the grid is a single fat step so neither changes anything.
    out = pl.pallas_call(
        kernel,
        out_shape=jax.ShapeDtypeStruct((COUT_P, N * L), jnp.float32),
        grid=(N // NB,),
        in_specs=[
            pl.BlockSpec((CIN_P, NL), lambda i: (0, i)),                  # x
            pl.BlockSpec((4, NL), lambda i: (0, 0)),                      # masks
            pl.BlockSpec((3, COUT_P, 3 * CIN_P), lambda i: (0, 0, 0)),    # w1
            pl.BlockSpec((3, COUT_P, 3 * COUT_P), lambda i: (0, 0, 0)),   # w2
            pl.BlockSpec((COUT_P, CIN_P), lambda i: (0, 0)),              # w3
            pl.BlockSpec((COUT_P, 3), lambda i: (0, 0)),                  # s1|b1|b23
        ],
        out_specs=pl.BlockSpec((COUT_P, NL), lambda i: (0, i)),
        compiler_params=pltpu.CompilerParams(
            dimension_semantics=("parallel",),
            vmem_limit_bytes=48 * 1024 * 1024),
    )(x, masks, w1d, w2d, w3m, cvec)

    out = out.reshape(COUT_P, N, L)
    out = jnp.transpose(out, (1, 0, 2))[:, :Cout, :].reshape(N, Cout, H, W)
    return out


# --------------------------------------------------------------------------
# pure-JAX reference (unfused f32, follows the PyTorch op ordering)
# --------------------------------------------------------------------------
def residual_block_reference(x, params, *, stride=1, layer=1, cnt=0,
                             scale_enable=True):
    hi = jax.lax.Precision.HIGHEST

    def conv(v, w, stride_, padding):
        return jax.lax.conv_general_dilated(
            v, w, window_strides=(stride_, stride_),
            padding=((padding, padding), (padding, padding)),
            dimension_numbers=("NCHW", "OIHW", "NCHW"), precision=hi)

    def bn(v, p):
        s, b = _fold_bn(*p)
        return v * s[None, :, None, None] + b[None, :, None, None]

    special = (layer == 3 or layer == 4) and cnt == 0
    out = conv(x, params["w1"], stride, 1)
    if scale_enable:
        out = out / 2
    out = _cut_out(out, 8)
    out = jnp.maximum(bn(out, params["bn1"]), 0.0)
    out = conv(out, params["w2"], 1, 1)
    if scale_enable and special:
        out = out / 2
    out = bn(out, params["bn2"])
    if stride:
        sc = conv(x, params["w3"], stride, 0)
        if scale_enable:
            sc = sc / (4.0 if special else 2.0)
        sc = bn(sc, params["bn3"])
        out = out + sc
        out = _cut_out(out, 8)
    return jnp.maximum(out, 0.0)


# --------------------------------------------------------------------------
# example inputs
# --------------------------------------------------------------------------
def _make_params(key, inchannel, outchannel):
    ks = jax.random.split(key, 6)

    def bn(k):
        k1, k2, k3, k4 = jax.random.split(k, 4)
        gamma = 1.0 + 0.1 * jax.random.normal(k1, (outchannel,), jnp.float32)
        beta = 0.1 * jax.random.normal(k2, (outchannel,), jnp.float32)
        mean = 0.1 * jax.random.normal(k3, (outchannel,), jnp.float32)
        var = 1.0 + 0.1 * jax.random.uniform(k4, (outchannel,), jnp.float32)
        return (gamma, beta, mean, var)

    return {
        "w1": 0.1 * jax.random.normal(ks[0], (outchannel, inchannel, 3, 3),
                                      jnp.float32),
        "w2": 0.1 * jax.random.normal(ks[1], (outchannel, outchannel, 3, 3),
                                      jnp.float32),
        "w3": 0.1 * jax.random.normal(ks[2], (outchannel, inchannel, 1, 1),
                                      jnp.float32),
        "bn1": bn(ks[3]),
        "bn2": bn(ks[4]),
        "bn3": bn(ks[5]),
    }


if __name__ == "__main__":
    key = jax.random.PRNGKey(0)
    k_x, k_p = jax.random.split(key)

    N, Cin, Cout, H, W = 2, 4, 8, 16, 16
    x = jax.random.normal(k_x, (N, Cin, H, W), jnp.float32)   # NCHW like torch
    params = _make_params(k_p, Cin, Cout)

    out = jax.block_until_ready(
        residual_block_forward(x, params, stride=1, layer=1, cnt=0,
                               scale_enable=True))
    ref = jax.block_until_ready(
        residual_block_reference(x, params, stride=1, layer=1, cnt=0,
                                 scale_enable=True))

    assert out.shape == (N, Cout, H, W)
    diff = jnp.abs(out - ref)
    max_diff = float(jnp.max(diff))
    mean_diff = float(jnp.mean(diff))
    # bf16 MXU operands + folding BN / power-of-two divides into the weights
    # perturb pre-quantization values by O(1e-3); cut_out snaps both results
    # to a 1/128 grid, so isolated elements can differ by one (rarely two)
    # quantization steps (1/128 = 0.0078).  Structural errors would be orders
    # of magnitude larger on most elements.
    assert max_diff < 3e-2, f"max |out - ref| too large: {max_diff}"
    assert mean_diff < 5e-3, f"mean |out - ref| too large: {mean_diff}"
    assert bool(jnp.all(out >= 0.0))  # final ReLU
    print("KERNEL_OK")
</pallas_src>

<mosaic_0001>
module attributes {stable_mosaic.version = 11 : i64} {
  func.func @_residual_block_kernel(%arg0: i32, %arg1: memref<8x512xf32, #tpu.memory_space<vmem>>, %arg2: memref<4x512xf32, #tpu.memory_space<vmem>>, %arg3: memref<3x8x24xbf16, #tpu.memory_space<vmem>>, %arg4: memref<3x8x24xbf16, #tpu.memory_space<vmem>>, %arg5: memref<8x8xbf16, #tpu.memory_space<vmem>>, %arg6: memref<8x3xf32, #tpu.memory_space<vmem>>, %arg7: memref<8x512xf32, #tpu.memory_space<vmem>>) attributes {dimension_semantics = [#tpu.dimension_semantics<parallel>], iteration_bounds = array<i64: 1>, scalar_prefetch = 0 : i64, scratch_operands = 0 : i64, tpu.core_type = #tpu.core_type<tc>, window_params = [{transform_indices = @transform_0, window_bounds = array<i64: 8, 512>}, {pipeline_mode = #tpu.pipeline_mode<synchronous>, transform_indices = @transform_1, window_bounds = array<i64: 4, 512>}, {pipeline_mode = #tpu.pipeline_mode<synchronous>, transform_indices = @transform_2, window_bounds = array<i64: 3, 8, 24>}, {pipeline_mode = #tpu.pipeline_mode<synchronous>, transform_indices = @transform_3, window_bounds = array<i64: 3, 8, 24>}, {pipeline_mode = #tpu.pipeline_mode<synchronous>, transform_indices = @transform_4, window_bounds = array<i64: 8, 8>}, {pipeline_mode = #tpu.pipeline_mode<synchronous>, transform_indices = @transform_5, window_bounds = array<i64: 8, 3>}, {transform_indices = @transform_6, window_bounds = array<i64: 8, 512>}]} {
    %c0 = arith.constant 0 : index
    %c0_0 = arith.constant 0 : index
    %0 = vector.load %arg1[%c0, %c0_0] : memref<8x512xf32, #tpu.memory_space<vmem>>, vector<8x512xf32>
    %c0_1 = arith.constant 0 : index
    %c0_2 = arith.constant 0 : index
    %1 = vector.load %arg2[%c0_1, %c0_2] : memref<4x512xf32, #tpu.memory_space<vmem>>, vector<1x512xf32>
    %c1 = arith.constant 1 : index
    %c0_3 = arith.constant 0 : index
    %2 = vector.load %arg2[%c1, %c0_3] : memref<4x512xf32, #tpu.memory_space<vmem>>, vector<1x512xf32>
    %c2 = arith.constant 2 : index
    %c0_4 = arith.constant 0 : index
    %3 = vector.load %arg2[%c2, %c0_4] : memref<4x512xf32, #tpu.memory_space<vmem>>, vector<1x512xf32>
    %c3 = arith.constant 3 : index
    %c0_5 = arith.constant 0 : index
    %4 = vector.load %arg2[%c3, %c0_5] : memref<4x512xf32, #tpu.memory_space<vmem>>, vector<1x512xf32>
    %c16_i32 = arith.constant 16 : i32
    %5 = tpu.dynamic_rotate %0 by %c16_i32 dim 1 : vector<8x512xf32>, i32 -> vector<8x512xf32>
    %6 = vector.broadcast %1 : vector<1x512xf32> to vector<8x512xf32>
    %7 = arith.mulf %5, %6 : vector<8x512xf32>
    %c496_i32 = arith.constant 496 : i32
    %8 = tpu.dynamic_rotate %0 by %c496_i32 dim 1 : vector<8x512xf32>, i32 -> vector<8x512xf32>
    %9 = vector.broadcast %2 : vector<1x512xf32> to vector<8x512xf32>
    %10 = arith.mulf %8, %9 : vector<8x512xf32>
    %11 = tpu.concatenate %7, %0, %10 in 0 : vector<8x512xf32>, vector<8x512xf32>, vector<8x512xf32> -> vector<24x512xf32>
    %12 = arith.truncf %11 : vector<24x512xf32> to vector<24x512xbf16>
    %c0_6 = arith.constant 0 : index
    %c0_7 = arith.constant 0 : index
    %c0_8 = arith.constant 0 : index
    %13 = vector.load %arg3[%c0_6, %c0_7, %c0_8] : memref<3x8x24xbf16, #tpu.memory_space<vmem>>, vector<1x8x24xbf16>
    %14 = vector.shape_cast %13 : vector<1x8x24xbf16> to vector<8x24xbf16>
    %cst = arith.constant dense<0.000000e+00> : vector<8x512xf32>
    %15 = tpu.matmul %14, %12, %cst {dimension_numbers = #tpu.dot_dimension_numbers<[1], [0], [0], [1], [0, 0, 1, 1], [], []>} : vector<8x24xbf16>, vector<24x512xbf16>, vector<8x512xf32> -> vector<8x512xf32>
    %c1_9 = arith.constant 1 : index
    %c0_10 = arith.constant 0 : index
    %c0_11 = arith.constant 0 : index
    %16 = vector.load %arg3[%c1_9, %c0_10, %c0_11] : memref<3x8x24xbf16, #tpu.memory_space<vmem>>, vector<1x8x24xbf16>
    %17 = vector.shape_cast %16 : vector<1x8x24xbf16> to vector<8x24xbf16>
    %cst_12 = arith.constant dense<0.000000e+00> : vector<8x512xf32>
    %18 = tpu.matmul %17, %12, %cst_12 {dimension_numbers = #tpu.dot_dimension_numbers<[1], [0], [0], [1], [0, 0, 1, 1], [], []>} : vector<8x24xbf16>, vector<24x512xbf16>, vector<8x512xf32> -> vector<8x512xf32>
    %c2_13 = arith.constant 2 : index
    %c0_14 = arith.constant 0 : index
    %c0_15 = arith.constant 0 : index
    %19 = vector.load %arg3[%c2_13, %c0_14, %c0_15] : memref<3x8x24xbf16, #tpu.memory_space<vmem>>, vector<1x8x24xbf16>
    %20 = vector.shape_cast %19 : vector<1x8x24xbf16> to vector<8x24xbf16>
    %cst_16 = arith.constant dense<0.000000e+00> : vector<8x512xf32>
    %21 = tpu.matmul %20, %12, %cst_16 {dimension_numbers = #tpu.dot_dimension_numbers<[1], [0], [0], [1], [0, 0, 1, 1], [], []>} : vector<8x24xbf16>, vector<24x512xbf16>, vector<8x512xf32> -> vector<8x512xf32>
    %c1_i32 = arith.constant 1 : i32
    %22 = tpu.dynamic_rotate %15 by %c1_i32 dim 1 : vector<8x512xf32>, i32 -> vector<8x512xf32>
    %23 = vector.broadcast %3 : vector<1x512xf32> to vector<8x512xf32>
    %24 = arith.mulf %22, %23 : vector<8x512xf32>
    %25 = arith.addf %18, %24 : vector<8x512xf32>
    %c511_i32 = arith.constant 511 : i32
    %26 = tpu.dynamic_rotate %21 by %c511_i32 dim 1 : vector<8x512xf32>, i32 -> vector<8x512xf32>
    %27 = vector.broadcast %4 : vector<1x512xf32> to vector<8x512xf32>
    %28 = arith.mulf %26, %27 : vector<8x512xf32>
    %29 = arith.addf %25, %28 : vector<8x512xf32>
    %cst_17 = arith.constant 1.280000e+02 : f32
    %30 = vector.broadcast %cst_17 : f32 to vector<8x512xf32>
    %31 = arith.mulf %29, %30 : vector<8x512xf32>
    %32 = math.roundeven %31 : vector<8x512xf32>
    %cst_18 = arith.constant -1.280000e+02 : f32
    %cst_19 = arith.constant 1.270000e+02 : f32
    %33 = vector.broadcast %cst_18 : f32 to vector<8x512xf32>
    %34 = arith.maximumf %33, %32 : vector<8x512xf32>
    %35 = vector.broadcast %cst_19 : f32 to vector<8x512xf32>
    %36 = arith.minimumf %35, %34 : vector<8x512xf32>
    %cst_20 = arith.constant 7.812500e-03 : f32
    %37 = vector.broadcast %cst_20 : f32 to vector<8x512xf32>
    %38 = arith.mulf %36, %37 : vector<8x512xf32>
    %c0_21 = arith.constant 0 : index
    %c0_22 = arith.constant 0 : index
    %39 = vector.load %arg6[%c0_21, %c0_22] : memref<8x3xf32, #tpu.memory_space<vmem>>, vector<8x1xf32>
    %c0_23 = arith.constant 0 : index
    %c1_24 = arith.constant 1 : index
    %40 = vector.load %arg6[%c0_23, %c1_24] : memref<8x3xf32, #tpu.memory_space<vmem>>, vector<8x1xf32>
    %c0_25 = arith.constant 0 : index
    %c2_26 = arith.constant 2 : index
    %41 = vector.load %arg6[%c0_25, %c2_26] : memref<8x3xf32, #tpu.memory_space<vmem>>, vector<8x1xf32>
    %42 = vector.broadcast %39 : vector<8x1xf32> to vector<8x512xf32>
    %43 = arith.mulf %38, %42 : vector<8x512xf32>
    %44 = vector.broadcast %40 : vector<8x1xf32> to vector<8x512xf32>
    %45 = arith.addf %43, %44 : vector<8x512xf32>
    %cst_27 = arith.constant 0.000000e+00 : f32
    %46 = vector.broadcast %cst_27 : f32 to vector<8x512xf32>
    %47 = arith.maximumf %45, %46 : vector<8x512xf32>
    %c16_i32_28 = arith.constant 16 : i32
    %48 = tpu.dynamic_rotate %47 by %c16_i32_28 dim 1 : vector<8x512xf32>, i32 -> vector<8x512xf32>
    %49 = vector.broadcast %1 : vector<1x512xf32> to vector<8x512xf32>
    %50 = arith.mulf %48, %49 : vector<8x512xf32>
    %c496_i32_29 = arith.constant 496 : i32
    %51 = tpu.dynamic_rotate %47 by %c496_i32_29 dim 1 : vector<8x512xf32>, i32 -> vector<8x512xf32>
    %52 = vector.broadcast %2 : vector<1x512xf32> to vector<8x512xf32>
    %53 = arith.mulf %51, %52 : vector<8x512xf32>
    %54 = tpu.concatenate %50, %47, %53 in 0 : vector<8x512xf32>, vector<8x512xf32>, vector<8x512xf32> -> vector<24x512xf32>
    %55 = arith.truncf %54 : vector<24x512xf32> to vector<24x512xbf16>
    %c0_30 = arith.constant 0 : index
    %c0_31 = arith.constant 0 : index
    %c0_32 = arith.constant 0 : index
    %56 = vector.load %arg4[%c0_30, %c0_31, %c0_32] : memref<3x8x24xbf16, #tpu.memory_space<vmem>>, vector<1x8x24xbf16>
    %57 = vector.shape_cast %56 : vector<1x8x24xbf16> to vector<8x24xbf16>
    %cst_33 = arith.constant dense<0.000000e+00> : vector<8x512xf32>
    %58 = tpu.matmul %57, %55, %cst_33 {dimension_numbers = #tpu.dot_dimension_numbers<[1], [0], [0], [1], [0, 0, 1, 1], [], []>} : vector<8x24xbf16>, vector<24x512xbf16>, vector<8x512xf32> -> vector<8x512xf32>
    %c1_34 = arith.constant 1 : index
    %c0_35 = arith.constant 0 : index
    %c0_36 = arith.constant 0 : index
    %59 = vector.load %arg4[%c1_34, %c0_35, %c0_36] : memref<3x8x24xbf16, #tpu.memory_space<vmem>>, vector<1x8x24xbf16>
    %60 = vector.shape_cast %59 : vector<1x8x24xbf16> to vector<8x24xbf16>
    %cst_37 = arith.constant dense<0.000000e+00> : vector<8x512xf32>
    %61 = tpu.matmul %60, %55, %cst_37 {dimension_numbers = #tpu.dot_dimension_numbers<[1], [0], [0], [1], [0, 0, 1, 1], [], []>} : vector<8x24xbf16>, vector<24x512xbf16>, vector<8x512xf32> -> vector<8x512xf32>
    %c2_38 = arith.constant 2 : index
    %c0_39 = arith.constant 0 : index
    %c0_40 = arith.constant 0 : index
    %62 = vector.load %arg4[%c2_38, %c0_39, %c0_40] : memref<3x8x24xbf16, #tpu.memory_space<vmem>>, vector<1x8x24xbf16>
    %63 = vector.shape_cast %62 : vector<1x8x24xbf16> to vector<8x24xbf16>
    %cst_41 = arith.constant dense<0.000000e+00> : vector<8x512xf32>
    %64 = tpu.matmul %63, %55, %cst_41 {dimension_numbers = #tpu.dot_dimension_numbers<[1], [0], [0], [1], [0, 0, 1, 1], [], []>} : vector<8x24xbf16>, vector<24x512xbf16>, vector<8x512xf32> -> vector<8x512xf32>
    %c1_i32_42 = arith.constant 1 : i32
    %65 = tpu.dynamic_rotate %58 by %c1_i32_42 dim 1 : vector<8x512xf32>, i32 -> vector<8x512xf32>
    %66 = vector.broadcast %3 : vector<1x512xf32> to vector<8x512xf32>
    %67 = arith.mulf %65, %66 : vector<8x512xf32>
    %68 = arith.addf %61, %67 : vector<8x512xf32>
    %c511_i32_43 = arith.constant 511 : i32
    %69 = tpu.dynamic_rotate %64 by %c511_i32_43 dim 1 : vector<8x512xf32>, i32 -> vector<8x512xf32>
    %70 = vector.broadcast %4 : vector<1x512xf32> to vector<8x512xf32>
    %71 = arith.mulf %69, %70 : vector<8x512xf32>
    %72 = arith.addf %68, %71 : vector<8x512xf32>
    %73 = vector.broadcast %41 : vector<8x1xf32> to vector<8x512xf32>
    %74 = arith.addf %72, %73 : vector<8x512xf32>
    %c0_44 = arith.constant 0 : index
    %c0_45 = arith.constant 0 : index
    %75 = vector.load %arg5[%c0_44, %c0_45] : memref<8x8xbf16, #tpu.memory_space<vmem>>, vector<8x8xbf16>
    %76 = arith.truncf %0 : vector<8x512xf32> to vector<8x512xbf16>
    %cst_46 = arith.constant dense<0.000000e+00> : vector<8x512xf32>
    %77 = tpu.matmul %75, %76, %cst_46 {dimension_numbers = #tpu.dot_dimension_numbers<[1], [0], [0], [1], [0, 0, 1, 1], [], []>} : vector<8x8xbf16>, vector<8x512xbf16>, vector<8x512xf32> -> vector<8x512xf32>
    %78 = arith.addf %74, %77 : vector<8x512xf32>
    %cst_47 = arith.constant 1.280000e+02 : f32
    %79 = vector.broadcast %cst_47 : f32 to vector<8x512xf32>
    %80 = arith.mulf %78, %79 : vector<8x512xf32>
    %81 = math.roundeven %80 : vector<8x512xf32>
    %cst_48 = arith.constant -1.280000e+02 : f32
    %cst_49 = arith.constant 1.270000e+02 : f32
    %82 = vector.broadcast %cst_48 : f32 to vector<8x512xf32>
    %83 = arith.maximumf %82, %81 : vector<8x512xf32>
    %84 = vector.broadcast %cst_49 : f32 to vector<8x512xf32>
    %85 = arith.minimumf %84, %83 : vector<8x512xf32>
    %cst_50 = arith.constant 7.812500e-03 : f32
    %86 = vector.broadcast %cst_50 : f32 to vector<8x512xf32>
    %87 = arith.mulf %85, %86 : vector<8x512xf32>
    %cst_51 = arith.constant 0.000000e+00 : f32
    %88 = vector.broadcast %cst_51 : f32 to vector<8x512xf32>
    %89 = arith.maximumf %87, %88 : vector<8x512xf32>
    %c0_52 = arith.constant 0 : index
    %c0_53 = arith.constant 0 : index
    %90 = vector.load %arg7[%c0_52, %c0_53] : memref<8x512xf32, #tpu.memory_space<vmem>>, vector<8x512xf32>
    tpu.vector_store %arg7[%c0_52, %c0_53], %89 {strides = array<i32>} : memref<8x512xf32, #tpu.memory_space<vmem>>, vector<8x512xf32>,
    return
  }
  func.func @transform_0(%arg0: i32) -> (i32, i32) {
    %c0_i32 = arith.constant 0 : i32
    %c0_i32_0 = arith.constant 0 : i32
    return %c0_i32, %arg0 : i32, i32
  }
  func.func @transform_1(%arg0: i32) -> (i32, i32) {
    %c0_i32 = arith.constant 0 : i32
    %c0_i32_0 = arith.constant 0 : i32
    %c0_i32_1 = arith.constant 0 : i32
    return %c0_i32, %c0_i32_0 : i32, i32
  }
  func.func @transform_2(%arg0: i32) -> (i32, i32, i32) {
    %c0_i32 = arith.constant 0 : i32
    %c0_i32_0 = arith.constant 0 : i32
    %c0_i32_1 = arith.constant 0 : i32
    %c0_i32_2 = arith.constant 0 : i32
    return %c0_i32, %c0_i32_0, %c0_i32_1 : i32, i32, i32
  }
  func.func @transform_3(%arg0: i32) -> (i32, i32, i32) {
    %c0_i32 = arith.constant 0 : i32
    %c0_i32_0 = arith.constant 0 : i32
    %c0_i32_1 = arith.constant 0 : i32
    %c0_i32_2 = arith.constant 0 : i32
    return %c0_i32, %c0_i32_0, %c0_i32_1 : i32, i32, i32
  }
  func.func @transform_4(%arg0: i32) -> (i32, i32) {
    %c0_i32 = arith.constant 0 : i32
    %c0_i32_0 = arith.constant 0 : i32
    %c0_i32_1 = arith.constant 0 : i32
    return %c0_i32, %c0_i32_0 : i32, i32
  }
  func.func @transform_5(%arg0: i32) -> (i32, i32) {
    %c0_i32 = arith.constant 0 : i32
    %c0_i32_0 = arith.constant 0 : i32
    %c0_i32_1 = arith.constant 0 : i32
    return %c0_i32, %c0_i32_0 : i32, i32
  }
  func.func @transform_6(%arg0: i32) -> (i32, i32) {
    %c0_i32 = arith.constant 0 : i32
    %c0_i32_0 = arith.constant 0 : i32
    return %c0_i32, %arg0 : i32, i32
  }
}

</mosaic_0001>

<bundles_post_ra>
// kernel: residual_block_forward.1
= control target key start
LH: loop header
LB: loop body
LE: loop exit
PB: predicated region body
PF: predicated region fallthrough
CT: control target
= control target key end

     0   :  { %s1086_s25 = smov 16   ;;  %v1087_v4 = vmov 0   ;;  %s1088_s30 = smov 112   ;;  %v43_v5 = vlaneseq  ;;  %vm126_vm2 = vcmask 1043456   ;;  %vm122_vm3 = vcmask 195584   ;;  %s1458_s0 = inlined_call_operand.vmem [shape: f32[8,512], index: 0, kind: input, shape index: {}]   ;;  %s1459_s1 = inlined_call_operand.vmem [shape: f32[4,512], index: 1, kind: input, shape index: {}]   ;;  %s1460_s2 = inlined_call_operand.vmem [shape: bf16[3,8,24], index: 2, kind: input, shape index: {}]   ;;  %s1461_s5 = inlined_call_operand.vmem [shape: f32[8,3], index: 5, kind: input, shape index: {}]   ;;  %s1462_s3 = inlined_call_operand.vmem [shape: bf16[3,8,24], index: 3, kind: input, shape index: {}]   ;;  %s1463_s4 = inlined_call_operand.vmem [shape: bf16[8,8], index: 4, kind: input, shape index: {}]   ;;  %s1464_s6 = inlined_call_operand.vmem [shape: f32[8,512], index: 6, kind: output, shape index: {}]  }
   0x1   :  { %v1131_v0 = vld [vmem:[%s1458_s0 + $0x10] sm:$0xff]  ;;  %v1136_v1 = vld [vmem:[%s1458_s0] sm:$0xff]  ;;  %v1145_v2 = vld [vmem:[%s1458_s0 + $0x18] sm:$0xff]  ;;  %171 = vmatprep.mubr.bf16.mxu0 %v1087_v4  ;;  %212 = vmatprep.mubr.bf16.mxu1 %v1087_v4  ;;  %v1089_v59 = vmov 1   ;;  %s1090_s16 = smov 1   ;;  %vm878_vm6 = vcmask 64512  }
   0x2   :  { %39 = vrot.lane.b32.xlu1 %v1131_v0, %s1086_s25  ;;  %35 = vrot.lane.b32.xlu0 %v1136_v1, %s1086_s25  ;;  %v1150_v3 = vld [vmem:[%s1458_s0 + $0x8] sm:$0xff]  ;;  %v52_v6 = vshrl.u32 %v43_v5, 7  ;;  %v1167_v7 = vand.u32 127, %v43_v5  ;;  %v121_v56 = vld [vmem:[%s1460_s2] sm:$0xf] }
   0x3   :  { %1082 = vset.pattern.permute.xlu0 %v1087_v4  ;;  %v28_v12 = vld [vmem:[%s1459_s1] ss:$4 sm:$0xf]  ;;  %v1012_v15 = vld [vmem:[%s1459_s1 + $0x1] ss:$4 sm:$0xf]  ;;  %1083 = vset.pattern.permute.xlu1 %v1089_v59 }
   0x4   :  { %v1169_v8 = vsub.s32 0, %v52_v6  ;;  %v1171_v9 = vsub.s32 3, %v52_v6  ;;  %v1173_v10 = vsub.s32 1, %v52_v6  ;;  %v1175_v11 = vsub.s32 2, %v52_v6  ;;  %v1020_v57 = vld [vmem:[%s1460_s2 + $0x8] sm:$0xf] }
   0x5   :  { %vm45_vm0 = vcmp.lt.s32.totalorder %v1167_v7, 16  ;;  %vm83_vm1 = vcmp.lt.s32.totalorder %v1167_v7, 112  ;;  %v1019_v58 = vld [vmem:[%s1460_s2 + $0x4] sm:$0xf]  ;;  %s1091_s2 = smov 127   ;;  %vm318_vm4 = vcmp.lt.s32.totalorder %v1167_v7, 1 }
   0x6   :  { %41 = vrot.lane.b32.xlu1 %v1145_v2, %s1086_s25  ;;  %37 = vrot.lane.b32.xlu0 %v1150_v3, %s1086_s25  ;;  %v1185_v16 = vrot.slane %v28_v12, %v1169_v8  ;;  %v1188_v17 = vrot.slane %v28_v12, %v1171_v9  ;;  %v1191_v18 = vrot.slane %v28_v12, %v1173_v10  ;;  %vm441_vm5 = vcmp.lt.s32.totalorder %v1167_v7, 127 }
   0x7   :  { %v1194_v19 = vrot.slane %v28_v12, %v1175_v11  ;;  %v1198_v22 = vrot.slane %v1012_v15, %v1169_v8  ;;  %v1219_v38 = vrot.slane %v1012_v15, %v1171_v9  ;;  %v1223_v40 = vrot.slane %v1012_v15, %v1173_v10 }
   0x8   :  { %v1226_v41 = vrot.slane %v1012_v15, %v1175_v11 }
   0xa   :  { %77 = vrot.lane.b32.xlu1 %v1150_v3, %s1088_s30  ;;  %75 = vrot.lane.b32.xlu0 %v1136_v1, %s1088_s30 }
   0xe   :  { %81 = vrot.lane.b32.xlu1 %v1145_v2, %s1088_s30  ;;  %79 = vrot.lane.b32.xlu0 %v1131_v0, %s1088_s30 }
  0x74   :  { %v40_v13 = vpop.permute.xlu1 %39  ;;  %v36_v14 = vpop.permute.xlu0 %35 }
  0x78   :  { %v42_v20 = vpop.permute.xlu1 %41  ;;  %v38_v21 = vpop.permute.xlu0 %37 }
  0x79   :  { %v46_v23 = vsel %vm45_vm0, %v40_v13, %v42_v20  ;;  %v49_v24 = vsel %vm45_vm0, %v42_v20, %v36_v14  ;;  %v47_v25 = vsel %vm45_vm0, %v38_v21, %v40_v13  ;;  %v48_v26 = vsel %vm45_vm0, %v36_v14, %v38_v21 }
  0x7a   :  { %v71_v27 = vmul.f32 %v1185_v16, %v49_v24  ;;  %v74_v28 = vmul.f32 %v1188_v17, %v46_v23  ;;  %v72_v29 = vmul.f32 %v1191_v18, %v48_v26  ;;  %v73_v30 = vmul.f32 %v1194_v19, %v47_v25 }
  0x7c   :  { %v78_v31 = vpop.permute.xlu1 %77  ;;  %v76_v32 = vpop.permute.xlu0 %75  ;;  %v114_v33 = vpack.c.bf16 %v1150_v3, %v72_v29  ;;  %v116_v34 = vpack.c.bf16 %v1145_v2, %v74_v28  ;;  %v113_v35 = vpack.c.bf16 %v1136_v1, %v71_v27  ;;  %v115_v36 = vpack.c.bf16 %v1131_v0, %v73_v30  ;;  %v1277_v27 = vld [vmem:[%s1461_s5] sm:$0xff] }
  0x7d   :  { %v86_v37 = vsel %vm83_vm1, %v76_v32, %v78_v31 }
  0x7e   :  { %v109_v39 = vmul.f32 %v1198_v22, %v86_v37  ;;  %139 = vmatprep.subr.bf16.mxu0 %v114_v33  ;;  %180 = vmatprep.subr.bf16.mxu1 %v116_v34 }
  0x7f   :  { %140 = vmatpush1.bf16.msra.mxu0 %v113_v35  ;;  %181 = vmatpush1.bf16.msra.mxu1 %v115_v36 }
  0x80   :  { %v82_v42 = vpop.permute.xlu1 %81  ;;  %v80_v43 = vpop.permute.xlu0 %79  ;;  %v117_v47 = vpack.c.bf16 %v109_v39, %v109_v39  ;;  %v1013_v39 = vld [vmem:[%s1459_s1 + $0x2] ss:$4 sm:$0xf] }
  0x81   :  { %v87_v44 = vsel %vm83_vm1, %v82_v42, %v76_v32  ;;  %v84_v45 = vsel %vm83_vm1, %v80_v43, %v82_v42  ;;  %v85_v46 = vsel %vm83_vm1, %v78_v31, %v80_v43  ;;  %v1286_v42 = vrot.slane %v1013_v39, %v1169_v8 }
  0x82   :  { %v112_v48 = vmul.f32 %v1219_v38, %v87_v44  ;;  %v110_v49 = vmul.f32 %v1223_v40, %v85_v46  ;;  %v111_v50 = vmul.f32 %v1226_v41, %v84_v45  ;;  %v128_v54 = vsel %vm126_vm2, %v117_v47, 0  ;;  %v1014_v44 = vld [vmem:[%s1459_s1 + $0x3] ss:$4 sm:$0xf] }
  0x83   :  { %v1292_v45 = vrot.slane %v1013_v39, %v1173_v10 }
  0x84   :  { %v120_v51 = vpack.c.bf16 %v112_v48, %v112_v48  ;;  %v118_v52 = vpack.c.bf16 %v110_v49, %v110_v49  ;;  %v119_v53 = vpack.c.bf16 %v111_v50, %v111_v50  ;;  %v1299_v49 = vrot.slane %v1013_v39, %v1175_v11 }
  0x85   :  { %v1302_v50 = vrot.slane %v1013_v39, %v1171_v9 }
  0x86   :  { %1015 = vmatprep.subr.msk.bf16.mxu0 %vm126_vm2, %v118_v52  ;;  %1017 = vmatprep.subr.msk.bf16.mxu1 %vm126_vm2, %v120_v51  ;;  %v134_v55 = vsel %vm126_vm2, %v119_v53, 0  ;;  %v1309_v53 = vrot.slane %v1014_v44, %v1169_v8 }
  0x87   :  { %142 = vmatpush1.bf16.msra.mxu0 %v128_v54  ;;  %183 = vmatpush1.bf16.msra.mxu1 %v134_v55 }
  0x88   :  { %228 = vmatprep.subr.bf16.mxu0 %v114_v33  ;;  %269 = vmatprep.subr.bf16.mxu1 %v116_v34 }
  0x8a   :  { %1016 = vmatmul.mubr.msk.bf16.vlgmr.msra.gmra.mrb[0].mxu0 %vm122_vm3, %v121_v56  ;;  %1018 = vmatmul.mubr.msk.bf16.vlgmr.msra.gmra.mrb[0].mxu1 %vm122_vm3, %v121_v56 }
  0x8b   :  { %229 = vmatpush1.bf16.msra.mxu0 %v113_v35  ;;  %270 = vmatpush1.bf16.msra.mxu1 %v115_v36 }
  0x8c   :  { %1021 = vmatprep.subr.msk.bf16.mxu0 %vm126_vm2, %v118_v52  ;;  %1023 = vmatprep.subr.msk.bf16.mxu1 %vm126_vm2, %v120_v51 }
  0x8d   :  { %260 = vmatprep.mubr.bf16.mxu0 %v1087_v4  ;;  %301 = vmatprep.mubr.bf16.mxu1 %v1087_v4 }
  0x8f   :  { %231 = vmatpush1.bf16.msra.mxu0 %v128_v54  ;;  %272 = vmatpush1.bf16.msra.mxu1 %v134_v55 }
  0x90   :  { %351 = vmatprep.subr.bf16.mxu0 %v114_v33  ;;  %392 = vmatprep.subr.bf16.mxu1 %v116_v34 }
  0x92   :  { %1022 = vmatmul.mubr.msk.bf16.vlgmr.msra.gmra.mrb[4].mxu0 %vm122_vm3, %v1020_v57  ;;  %1024 = vmatmul.mubr.msk.bf16.vlgmr.msra.gmra.mrb[4].mxu1 %vm122_vm3, %v1020_v57 }
  0x93   :  { %352 = vmatpush1.bf16.msra.mxu0 %v113_v35  ;;  %393 = vmatpush1.bf16.msra.mxu1 %v115_v36 }
  0x94   :  { %1025 = vmatprep.subr.msk.bf16.mxu0 %vm126_vm2, %v118_v52  ;;  %1027 = vmatprep.subr.msk.bf16.mxu1 %vm126_vm2, %v120_v51 }
  0x95   :  { %383 = vmatprep.mubr.bf16.mxu0 %v1087_v4  ;;  %424 = vmatprep.mubr.bf16.mxu1 %v1087_v4 }
  0x97   :  { %354 = vmatpush1.bf16.msra.mxu0 %v128_v54  ;;  %395 = vmatpush1.bf16.msra.mxu1 %v134_v55 }
  0x9a   :  { %1026 = vmatmul.mubr.msk.bf16.vlgmr.msra.gmra.mrb[8].mxu0 %vm122_vm3, %v1019_v58  ;;  %1028 = vmatmul.mubr.msk.bf16.vlgmr.msra.gmra.mrb[8].mxu1 %vm122_vm3, %v1019_v58 }
  0x9b   :  { %605 = vmatprep.mubr.bf16.mxu0 %v1087_v4  ;;  %646 = vmatprep.mubr.bf16.mxu1 %v1087_v4 }
 0x15d   :  { %v173_v60 = vpop.f32.mrb[0].mxu0  ;;  %v214_v61 = vpop.f32.mrb[0].mxu1 }
 0x15e   :  { %310 = vrot.lane.b32.xlu0 %v173_v60, %s1090_s16  ;;  %v175_v62 = vpop.f32.mrb[1].mxu0  ;;  %v216_v63 = vpop.f32.mrb[1].mxu1  ;;  %v1318_v60 = vrot.slane %v1014_v44, %v1173_v10 }
 0x15f   :  { %312 = vrot.lane.b32.xlu1 %v175_v62, %s1090_s16  ;;  %v177_v5 = vpop.f32.mrb[2].mxu0  ;;  %v218_v6 = vpop.f32.mrb[2].mxu1 }
 0x160   :  { %v178_v12 = vpop.f32.mrb[3].mxu0  ;;  %v219_v13 = vpop.f32.mrb[3].mxu1  ;;  %v1326_v5 = vrot.slane %v1014_v44, %v1171_v9 }
 0x162   :  { %314 = vrot.lane.b32.xlu0 %v214_v61, %s1090_s16  ;;  %v1321_v61 = vrot.slane %v1014_v44, %v1175_v11 }
 0x163   :  { %316 = vrot.lane.b32.xlu1 %v216_v63, %s1090_s16 }
 0x165   :  { %v262_v14 = vpop.f32.mrb[4].mxu0  ;;  %v303_v15 = vpop.f32.mrb[4].mxu1 }
 0x166   :  { %v264_v20 = vpop.f32.mrb[5].mxu0  ;;  %433 = vrot.lane.b32.xlu0 %v262_v14, %s1091_s2  ;;  %v305_v21 = vpop.f32.mrb[5].mxu1 }
 0x167   :  { %v266_v23 = vpop.f32.mrb[6].mxu0  ;;  %435 = vrot.lane.b32.xlu1 %v264_v20, %s1091_s2  ;;  %v307_v24 = vpop.f32.mrb[6].mxu1 }
 0x168   :  { %v267_v25 = vpop.f32.mrb[7].mxu0  ;;  %v308_v26 = vpop.f32.mrb[7].mxu1 }
 0x16a   :  { %437 = vrot.lane.b32.xlu0 %v303_v15, %s1091_s2 }
 0x16b   :  { %439 = vrot.lane.b32.xlu1 %v305_v21, %s1091_s2 }
 0x16d   :  { %v385_v28 = vpop.f32.mrb[8].mxu0  ;;  %v426_v29 = vpop.f32.mrb[8].mxu1 }
 0x16e   :  { %498 = vperm.xlu0 %1082, %v1277_v27   ;;  %v387_v30 = vpop.f32.mrb[9].mxu0  ;;  %v428_v31 = vpop.f32.mrb[9].mxu1 }
 0x16f   :  { %506 = vperm.xlu1 %1083, %v1277_v27   ;;  %v389_v32 = vpop.f32.mrb[10].mxu0  ;;  %v430_v33 = vpop.f32.mrb[10].mxu1 }
 0x170   :  { %v390_v34 = vpop.f32.mrb[11].mxu0  ;;  %v431_v35 = vpop.f32.mrb[11].mxu1 }
 0x1d0   :  { %v311_v36 = vpop.permute.xlu0 %310 }
 0x1d1   :  { %v313_v37 = vpop.permute.xlu1 %312 }
 0x1d2   :  { %v321_v47 = vsel %vm318_vm4, %v311_v36, %v313_v37 }
 0x1d3   :  { %v345_v56 = vmul.f32 %v1292_v45, %v321_v47 }
 0x1d4   :  { %v315_v43 = vpop.permute.xlu0 %314 }
 0x1d5   :  { %v317_v46 = vpop.permute.xlu1 %316  ;;  %v320_v51 = vsel %vm318_vm4, %v313_v37, %v315_v43  ;;  %v388_v12 = vadd.f32 %v387_v30, %v345_v56 }
 0x1d6   :  { %v322_v48 = vsel %vm318_vm4, %v317_v46, %v311_v36  ;;  %v319_v54 = vsel %vm318_vm4, %v315_v43, %v317_v46  ;;  %v346_v58 = vmul.f32 %v1299_v49, %v320_v51 }
 0x1d7   :  { %v344_v52 = vmul.f32 %v1286_v42, %v322_v48  ;;  %v347_v62 = vmul.f32 %v1302_v50, %v319_v54 }
 0x1d8   :  { %v434_v55 = vpop.permute.xlu0 %433  ;;  %v427_v10 = vadd.f32 %v426_v29, %v346_v58 }
 0x1d9   :  { %v436_v57 = vpop.permute.xlu1 %435  ;;  %v386_v8 = vadd.f32 %v385_v28, %v344_v52  ;;  %v429_v23 = vadd.f32 %v428_v31, %v347_v62 }
 0x1da   :  { %v444_v59 = vsel %vm441_vm5, %v434_v55, %v436_v57 }
 0x1db   :  { %v467_v63 = vmul.f32 %v1309_v53, %v444_v59 }
 0x1dc   :  { %v438_v6 = vpop.permute.xlu0 %437 }
 0x1dd   :  { %v471_v13 = vadd.f32 %v467_v63, %v386_v8  ;;  %v443_v14 = vsel %vm441_vm5, %v436_v57, %v438_v6  ;;  %v440_v15 = vpop.permute.xlu1 %439 }
 0x1de   :  { %v468_v20 = vmul.f32 %v1318_v60, %v443_v14  ;;  %v442_v11 = vsel %vm441_vm5, %v438_v6, %v440_v15  ;;  %v445_v21 = vsel %vm441_vm5, %v440_v15, %v434_v55 }
 0x1df   :  { %v475_v24 = vmul.f32 128.0, %v471_v13  ;;  %v469_v9 = vmul.f32 %v1321_v61, %v442_v11  ;;  %v470_v25 = vmul.f32 %v1326_v5, %v445_v21  ;;  %v1092_v21 = vmov 2  }
 0x1e0   :  { %v472_v26 = vadd.f32 %v468_v20, %v388_v12  ;;  %1084 = vset.pattern.permute.xlu1 %v1092_v21  ;;  %1085 = vset.pattern.permute.xlu0 %v1092_v21 }
 0x1e1   :  { %v1067_v28 = vround.rtne.f32 %v475_v24  ;;  %v473_v30 = vadd.f32 %v469_v9, %v427_v10  ;;  %v474_v32 = vadd.f32 %v470_v25, %v429_v23 }
 0x1e2   :  { %v476_v33 = vmul.f32 128.0, %v472_v26 }
 0x1e3   :  { %v477_v29 = vmul.f32 128.0, %v473_v30  ;;  %v478_v34 = vmul.f32 128.0, %v474_v32  ;;  %v483_v35 = vmax.f32 %v1067_v28, -128.0 }
 0x1e4   :  { %v1068_v36 = vround.rtne.f32 %v476_v33 }
 0x1e5   :  { %v1069_v37 = vround.rtne.f32 %v477_v29  ;;  %v1070_v39 = vround.rtne.f32 %v478_v34  ;;  %v487_v31 = vmin.f32 %v483_v35, 127.0 }
 0x1e6   :  { %v484_v43 = vmax.f32 %v1068_v36, -128.0 }
 0x1e7   :  { %v485_v44 = vmax.f32 %v1069_v37, -128.0  ;;  %v486_v46 = vmax.f32 %v1070_v39, -128.0  ;;  %v491_v55 = vmul.f32 0.0078125, %v487_v31 }
 0x1e8   :  { %v488_v47 = vmin.f32 %v484_v43, 127.0 }
 0x1e9   :  { %v489_v48 = vmin.f32 %v485_v44, 127.0  ;;  %v490_v51 = vmin.f32 %v486_v46, 127.0 }
 0x1ea   :  { %v492_v56 = vmul.f32 0.0078125, %v488_v47 }
 0x1eb   :  { %v493_v52 = vmul.f32 0.0078125, %v489_v48  ;;  %v494_v54 = vmul.f32 0.0078125, %v490_v51 }
 0x1ed   :  { %v499_v57 = vpop.permute.xlu0 %498 }
 0x1ee   :  { %v501_v58 = vmul.f32 %v499_v57, %v491_v55  ;;  %v502_v59 = vmul.f32 %v499_v57, %v492_v56  ;;  %v503_v8 = vmul.f32 %v499_v57, %v493_v52  ;;  %v504_v62 = vmul.f32 %v499_v57, %v494_v54  ;;  %v507_v63 = vpop.permute.xlu1 %506 }
 0x1f0   :  { %v510_v6 = vadd.f32 %v507_v63, %v502_v59  ;;  %v509_v12 = vadd.f32 %v507_v63, %v501_v58  ;;  %v512_v15 = vadd.f32 %v507_v63, %v504_v62  ;;  %v511_v10 = vadd.f32 %v507_v63, %v503_v8 }
 0x1f1   :  { %v877_v59 = vpack.c.bf16 %v1145_v2, %v1145_v2  ;;  %v874_v8 = vpack.c.bf16 %v1136_v1, %v1136_v1  ;;  %v876_v62 = vpack.c.bf16 %v1131_v0, %v1131_v0  ;;  %v873_v0 = vld [vmem:[%s1463_s4] sm:$0xf] }
 0x1f2   :  { %v514_v13 = vmax.f32 %v510_v6, 0.0  ;;  %v513_v14 = vmax.f32 %v509_v12, 0.0  ;;  %v516_v20 = vmax.f32 %v512_v15, 0.0  ;;  %v515_v11 = vmax.f32 %v511_v10, 0.0 }
 0x1f3   :  { %v883_v2 = vsel %vm126_vm2, %v874_v8, 0  ;;  %v889_v1 = vsel %vm126_vm2, %v876_v62, 0 }
 0x1f4   :  { %519 = vrot.lane.b32.xlu0 %v514_v13, %s1086_s25  ;;  %517 = vrot.lane.b32.xlu1 %v513_v14, %s1086_s25 }
 0x1f8   :  { %523 = vrot.lane.b32.xlu0 %v516_v20, %s1086_s25  ;;  %521 = vrot.lane.b32.xlu1 %v515_v11, %s1086_s25 }
 0x1fc   :  { %535 = vrot.lane.b32.xlu0 %v514_v13, %s1088_s30  ;;  %533 = vrot.lane.b32.xlu1 %v513_v14, %s1088_s30 }
 0x200   :  { %539 = vrot.lane.b32.xlu0 %v516_v20, %s1088_s30  ;;  %537 = vrot.lane.b32.xlu1 %v515_v11, %s1088_s30 }
 0x204   :  { %866 = vperm.xlu1 %1084, %v1277_v27  }
 0x266   :  { %v520_v23 = vpop.permute.xlu0 %519  ;;  %v518_v24 = vpop.permute.xlu1 %517 }
 0x267   :  { %v527_v9 = vsel %vm45_vm0, %v518_v24, %v520_v23 }
 0x268   :  { %v530_v25 = vmul.f32 %v527_v9, %v1191_v18 }
 0x26a   :  { %v524_v26 = vpop.permute.xlu0 %523  ;;  %v522_v28 = vpop.permute.xlu1 %521  ;;  %v550_v30 = vpack.c.bf16 %v514_v13, %v530_v25 }
 0x26b   :  { %v528_v32 = vsel %vm45_vm0, %v524_v26, %v518_v24  ;;  %v525_v33 = vsel %vm45_vm0, %v522_v28, %v524_v26  ;;  %v526_v29 = vsel %vm45_vm0, %v520_v23, %v522_v28 }
 0x26c   :  { %v529_v27 = vmul.f32 %v528_v32, %v1185_v16  ;;  %v531_v34 = vmul.f32 %v526_v29, %v1194_v19  ;;  %v532_v35 = vmul.f32 %v525_v33, %v1188_v17  ;;  %573 = vmatprep.subr.bf16.mxu0 %v550_v30 }
 0x26e   :  { %v549_v18 = vpack.c.bf16 %v513_v14, %v529_v27  ;;  %v551_v36 = vpack.c.bf16 %v515_v11, %v531_v34  ;;  %v536_v37 = vpop.permute.xlu0 %535  ;;  %v534_v39 = vpop.permute.xlu1 %533  ;;  %v552_v43 = vpack.c.bf16 %v516_v20, %v532_v35 }
 0x26f   :  { %v543_v44 = vsel %vm83_vm1, %v534_v39, %v536_v37 }
 0x270   :  { %v545_v46 = vmul.f32 %v543_v44, %v1198_v22  ;;  %574 = vmatpush1.bf16.msra.mxu0 %v549_v18  ;;  %614 = vmatprep.subr.bf16.mxu1 %v552_v43 }
 0x271   :  { %615 = vmatpush1.bf16.msra.mxu1 %v551_v36 }
 0x272   :  { %v540_v31 = vpop.permute.xlu0 %539  ;;  %v538_v16 = vpop.permute.xlu1 %537  ;;  %v553_v48 = vpack.c.bf16 %v545_v46, %v545_v46 }
 0x273   :  { %v544_v19 = vsel %vm83_vm1, %v540_v31, %v534_v39  ;;  %v541_v17 = vsel %vm83_vm1, %v538_v16, %v540_v31  ;;  %v542_v47 = vsel %vm83_vm1, %v536_v37, %v538_v16 }
 0x274   :  { %v548_v51 = vmul.f32 %v544_v19, %v1219_v38  ;;  %v546_v52 = vmul.f32 %v542_v47, %v1223_v40  ;;  %v547_v22 = vmul.f32 %v541_v17, %v1226_v41  ;;  %v562_v57 = vsel %vm126_vm2, %v553_v48, 0  ;;  %v557_v38 = vld [vmem:[%s1462_s3] sm:$0xf]  ;;  %v1034_v40 = vld [vmem:[%s1462_s3 + $0x8] sm:$0xf] }
 0x275   :  { %v875_v41 = vpack.c.bf16 %v1150_v3, %v1150_v3  ;;  %v1033_v3 = vld [vmem:[%s1462_s3 + $0x4] sm:$0xf] }
 0x276   :  { %v556_v54 = vpack.c.bf16 %v548_v51, %v548_v51  ;;  %v554_v55 = vpack.c.bf16 %v546_v52, %v546_v52  ;;  %v555_v56 = vpack.c.bf16 %v547_v22, %v547_v22 }
 0x278   :  { %1029 = vmatprep.subr.msk.bf16.mxu0 %vm126_vm2, %v554_v55  ;;  %1031 = vmatprep.subr.msk.bf16.mxu1 %vm126_vm2, %v556_v54  ;;  %v568_v58 = vsel %vm126_vm2, %v555_v56, 0 }
 0x279   :  { %576 = vmatpush1.bf16.msra.mxu0 %v562_v57  ;;  %617 = vmatpush1.bf16.msra.mxu1 %v568_v58 }
 0x27a   :  { %662 = vmatprep.subr.bf16.mxu0 %v550_v30  ;;  %703 = vmatprep.subr.bf16.mxu1 %v552_v43 }
 0x27c   :  { %1030 = vmatmul.mubr.msk.bf16.vlgmr.msra.gmra.mrb[12].mxu0 %vm122_vm3, %v557_v38  ;;  %1032 = vmatmul.mubr.msk.bf16.vlgmr.msra.gmra.mrb[12].mxu1 %vm122_vm3, %v557_v38 }
 0x27d   :  { %663 = vmatpush1.bf16.msra.mxu0 %v549_v18  ;;  %704 = vmatpush1.bf16.msra.mxu1 %v551_v36 }
 0x27e   :  { %1035 = vmatprep.subr.msk.bf16.mxu0 %vm126_vm2, %v554_v55  ;;  %1037 = vmatprep.subr.msk.bf16.mxu1 %vm126_vm2, %v556_v54 }
 0x27f   :  { %694 = vmatprep.mubr.bf16.mxu0 %v1087_v4  ;;  %735 = vmatprep.mubr.bf16.mxu1 %v1087_v4 }
 0x281   :  { %665 = vmatpush1.bf16.msra.mxu0 %v562_v57  ;;  %706 = vmatpush1.bf16.msra.mxu1 %v568_v58 }
 0x282   :  { %763 = vmatprep.subr.bf16.mxu0 %v550_v30  ;;  %804 = vmatprep.subr.bf16.mxu1 %v552_v43 }
 0x284   :  { %1036 = vmatmul.mubr.msk.bf16.vlgmr.msra.gmra.mrb[16].mxu0 %vm122_vm3, %v1034_v40  ;;  %1038 = vmatmul.mubr.msk.bf16.vlgmr.msra.gmra.mrb[16].mxu1 %vm122_vm3, %v1034_v40 }
 0x285   :  { %764 = vmatpush1.bf16.msra.mxu0 %v549_v18  ;;  %805 = vmatpush1.bf16.msra.mxu1 %v551_v36  ;;  %v867_v18 = vpop.permute.xlu1 %866 }
 0x286   :  { %1039 = vmatprep.subr.msk.bf16.mxu0 %vm126_vm2, %v554_v55  ;;  %1041 = vmatprep.subr.msk.bf16.mxu1 %vm126_vm2, %v556_v54 }
 0x287   :  { %795 = vmatprep.mubr.bf16.mxu0 %v1087_v4  ;;  %836 = vmatprep.mubr.bf16.mxu1 %v1087_v4 }
 0x289   :  { %766 = vmatpush1.bf16.msra.mxu0 %v562_v57  ;;  %807 = vmatpush1.bf16.msra.mxu1 %v568_v58 }
 0x28a   :  { %1043 = vmatprep.subr.msk.bf16.mxu0 %vm126_vm2, %v875_v41  ;;  %1045 = vmatprep.subr.msk.bf16.mxu1 %vm126_vm2, %v877_v59 }
 0x28c   :  { %1040 = vmatmul.mubr.msk.bf16.vlgmr.msra.gmra.mrb[20].mxu0 %vm122_vm3, %v1033_v3  ;;  %1042 = vmatmul.mubr.msk.bf16.vlgmr.msra.gmra.mrb[20].mxu1 %vm122_vm3, %v1033_v3 }
 0x28d   :  { %895 = vmatpush1.bf16.msra.mxu0 %v883_v2  ;;  %936 = vmatpush1.bf16.msra.mxu1 %v889_v1 }
 0x28e   :  { %926 = vmatprep.mubr.bf16.mxu0 %v1087_v4  ;;  %967 = vmatprep.mubr.bf16.mxu1 %v1087_v4 }
 0x298   :  { %1044 = vmatmul.mubr.msk.bf16.vlgmr.msra.gmra.mrb[20].mxu0 %vm878_vm6, %v873_v0  ;;  %1046 = vmatmul.mubr.msk.bf16.vlgmr.msra.gmra.mrb[20].mxu1 %vm878_vm6, %v873_v0 }
 0x34f   :  { %v607_v63 = vpop.f32.mrb[12].mxu0  ;;  %v648_v6 = vpop.f32.mrb[12].mxu1 }
 0x350   :  { %744 = vrot.lane.b32.xlu0 %v607_v63, %s1090_s16  ;;  %v609_v12 = vpop.f32.mrb[13].mxu0  ;;  %v650_v13 = vpop.f32.mrb[13].mxu1 }
 0x351   :  { %746 = vrot.lane.b32.xlu1 %v609_v12, %s1090_s16  ;;  %v611_v14 = vpop.f32.mrb[14].mxu0  ;;  %v652_v15 = vpop.f32.mrb[14].mxu1 }
 0x352   :  { %v612_v10 = vpop.f32.mrb[15].mxu0  ;;  %v653_v20 = vpop.f32.mrb[15].mxu1 }
 0x354   :  { %748 = vrot.lane.b32.xlu0 %v648_v6, %s1090_s16 }
 0x355   :  { %750 = vrot.lane.b32.xlu1 %v650_v13, %s1090_s16 }
 0x357   :  { %v696_v4 = vpop.f32.mrb[16].mxu0  ;;  %v737_v11 = vpop.f32.mrb[16].mxu1 }
 0x358   :  { %v698_v21 = vpop.f32.mrb[17].mxu0  ;;  %845 = vrot.lane.b32.xlu0 %v696_v4, %s1091_s2  ;;  %v739_v23 = vpop.f32.mrb[17].mxu1 }
 0x359   :  { %v700_v24 = vpop.f32.mrb[18].mxu0  ;;  %847 = vrot.lane.b32.xlu1 %v698_v21, %s1091_s2  ;;  %v741_v9 = vpop.f32.mrb[18].mxu1 }
 0x35a   :  { %v701_v25 = vpop.f32.mrb[19].mxu0  ;;  %v742_v26 = vpop.f32.mrb[19].mxu1 }
 0x35c   :  { %849 = vrot.lane.b32.xlu0 %v737_v11, %s1091_s2 }
 0x35d   :  { %851 = vrot.lane.b32.xlu1 %v739_v23, %s1091_s2 }
 0x36b   :  { %v969_v28 = vpop.f32.mrb[20].mxu1  ;;  %v928_v30 = vpop.f32.mrb[20].mxu0 }
 0x36c   :  { %v930_v32 = vpop.f32.mrb[21].mxu0  ;;  %v971_v33 = vpop.f32.mrb[21].mxu1 }
 0x36d   :  { %v932_v29 = vpop.f32.mrb[22].mxu0  ;;  %v973_v27 = vpop.f32.mrb[22].mxu1 }
 0x36e   :  { %v933_v34 = vpop.f32.mrb[23].mxu0  ;;  %v974_v35 = vpop.f32.mrb[23].mxu1 }
 0x3c2   :  { %v745_v36 = vpop.permute.xlu0 %744 }
 0x3c3   :  { %v747_v37 = vpop.permute.xlu1 %746 }
 0x3c4   :  { %v754_v16 = vsel %vm318_vm4, %v745_v36, %v747_v37 }
 0x3c5   :  { %v757_v22 = vmul.f32 %v754_v16, %v1292_v45 }
 0x3c6   :  { %v749_v39 = vpop.permute.xlu0 %748 }
 0x3c7   :  { %v751_v43 = vpop.permute.xlu1 %750  ;;  %v753_v17 = vsel %vm318_vm4, %v747_v37, %v749_v39 }
 0x3c8   :  { %v755_v44 = vsel %vm318_vm4, %v751_v43, %v745_v36  ;;  %v752_v51 = vsel %vm318_vm4, %v749_v39, %v751_v43  ;;  %v758_v57 = vmul.f32 %v753_v17, %v1299_v49 }
 0x3c9   :  { %v756_v47 = vmul.f32 %v755_v44, %v1286_v42  ;;  %v759_v38 = vmul.f32 %v752_v51, %v1302_v50 }
 0x3ca   :  { %v846_v46 = vpop.permute.xlu0 %845 }
 0x3cb   :  { %v848_v31 = vpop.permute.xlu1 %847 }
 0x3cc   :  { %v855_v19 = vsel %vm441_vm5, %v846_v46, %v848_v31 }
 0x3cd   :  { %v857_v48 = vmul.f32 %v855_v19, %v1309_v53 }
 0x3ce   :  { %v850_v52 = vpop.permute.xlu0 %849 }
 0x3cf   :  { %v1047_v54 = vadd.f32 %v857_v48, %v756_v47  ;;  %v854_v55 = vsel %vm441_vm5, %v848_v31, %v850_v52  ;;  %v852_v56 = vpop.permute.xlu1 %851 }
 0x3d0   :  { %v858_v58 = vmul.f32 %v854_v55, %v1318_v60  ;;  %v853_v42 = vsel %vm441_vm5, %v850_v52, %v852_v56  ;;  %v856_v53 = vsel %vm441_vm5, %v852_v56, %v846_v46 }
 0x3d1   :  { %v1048_v40 = vadd.f32 %v1047_v54, %v867_v18  ;;  %v859_v45 = vmul.f32 %v853_v42, %v1321_v61  ;;  %v860_v41 = vmul.f32 %v856_v53, %v1326_v5 }
 0x3d2   :  { %v1050_v59 = vadd.f32 %v858_v58, %v757_v22 }
 0x3d3   :  { %v1049_v8 = vadd.f32 %v1048_v40, %v928_v30  ;;  %v1053_v62 = vadd.f32 %v859_v45, %v758_v57  ;;  %v1056_v3 = vadd.f32 %v860_v41, %v759_v38 }
 0x3d4   :  { %v1051_v49 = vadd.f32 %v1050_v59, %v867_v18 }
 0x3d5   :  { %v980_v2 = vmul.f32 128.0, %v1049_v8  ;;  %v1054_v60 = vadd.f32 %v1053_v62, %v867_v18  ;;  %v1057_v1 = vadd.f32 %v1056_v3, %v867_v18 }
 0x3d6   :  { %v1052_v0 = vadd.f32 %v1051_v49, %v930_v32 }
 0x3d7   :  { %v1071_v63 = vround.rtne.f32 %v980_v2  ;;  %v1055_v6 = vadd.f32 %v1054_v60, %v969_v28  ;;  %v1058_v7 = vadd.f32 %v1057_v1, %v971_v33 }
 0x3d8   :  { %v981_v12 = vmul.f32 128.0, %v1052_v0 }
 0x3d9   :  { %v988_v13 = vmax.f32 %v1071_v63, -128.0  ;;  %v982_v50 = vmul.f32 128.0, %v1055_v6  ;;  %v983_v14 = vmul.f32 128.0, %v1058_v7 }
 0x3da   :  { %v1072_v15 = vround.rtne.f32 %v981_v12 }
 0x3db   :  { %v992_v61 = vmin.f32 %v988_v13, 127.0  ;;  %v1073_v10 = vround.rtne.f32 %v982_v50  ;;  %v1074_v5 = vround.rtne.f32 %v983_v14 }
 0x3dc   :  { %v989_v20 = vmax.f32 %v1072_v15, -128.0 }
 0x3dd   :  { %v996_v4 = vmul.f32 0.0078125, %v992_v61  ;;  %v990_v11 = vmax.f32 %v1073_v10, -128.0  ;;  %v991_v21 = vmax.f32 %v1074_v5, -128.0 }
 0x3de   :  { %v993_v23 = vmin.f32 %v989_v20, 127.0 }
 0x3df   :  { %v1000_v24 = vmax.f32 %v996_v4, 0.0  ;;  %v994_v9 = vmin.f32 %v990_v11, 127.0  ;;  %v995_v25 = vmin.f32 %v991_v21, 127.0 }
 0x3e0   :  { %v997_v26 = vmul.f32 0.0078125, %v993_v23 }
 0x3e1   :  { %1004 = vst [vmem:[%s1464_s6] sm:$0xff] %v1000_v24  ;;  %v998_v28 = vmul.f32 0.0078125, %v994_v9  ;;  %v999_v30 = vmul.f32 0.0078125, %v995_v25 }
 0x3e2   :  { %v1001_v32 = vmax.f32 %v997_v26, 0.0 }
 0x3e3   :  { %v1002_v33 = vmax.f32 %v998_v28, 0.0  ;;  %v1003_v29 = vmax.f32 %v999_v30, 0.0 }
 0x3e4   :  { %1005 = vst [vmem:[%s1464_s6 + $0x8] sm:$0xff] %v1001_v32 }
 0x3e5   :  { %1006 = vst [vmem:[%s1464_s6 + $0x10] sm:$0xff] %v1002_v33  ;;  %1007 = vst [vmem:[%s1464_s6 + $0x18] sm:$0xff] %v1003_v29 }

</bundles_post_ra>
